<compile_context>
chip_gen: v5e
topology: v5e:2x2
jax: 0.10.0
libtpu: 0.0.40
codegen_flags: <defaults>
</compile_context>

<pallas_src>
import jax
import jax.numpy as jnp
from jax.experimental import pallas as pl
from jax.experimental.pallas import tpu as pltpu


# --------------------------------------------------------------------------
# Fused pixel-attention kernel
# --------------------------------------------------------------------------

def _pa_kernel(x_ref, w1t_ref, b1_ref, w2_ref, b2_ref, o_ref):
    """out = x * sigmoid(w2 . relu(w1 @ x + b1) + b2), channels-first tiles."""
    x = x_ref[0]                                        # (C, T) float32
    # 1x1 conv #1 (C -> C//r): contraction over channels on the MXU,
    # bf16 operands / f32 accumulation.
    h = jnp.dot(w1t_ref[...], x.astype(jnp.bfloat16),
                preferred_element_type=jnp.float32)     # (Ch, T)
    h = jnp.maximum(h + b1_ref[...], 0.0)               # bias + ReLU (VPU)
    # 1x1 conv #2 (C//r -> 1): a 1-row matmul would waste the MXU; do a
    # VPU multiply + cross-sublane sum instead.
    logit = jnp.sum(h * w2_ref[...], axis=0, keepdims=True) + b2_ref[...]  # (1, T)
    # Sigmoid on the EUP, gate broadcast over the channel (sublane) axis.
    o_ref[0] = x * jax.nn.sigmoid(logit)


def _pick_hw_tile(hw, c):
    # ~4 MB of f32 per x block; double-buffered in + out stays well inside the
    # scoped-VMEM default on every TPU generation.
    cap = max(128, min(8192, ((1 << 20) // max(c, 1)) // 128 * 128))
    return hw if hw <= cap else cap


def pa_layer_forward(x, w1, b1, w2, b2):
    """PALayerwn forward pass.

    x : (B, C, H, W) float32   (PyTorch NCHW layout)
    w1: (C//r, C)    bfloat16  (effective weight of the first 1x1 conv)
    b1: (C//r, 1)    float32
    w2: (C//r, 1)    float32   (effective weight of the second 1x1 conv)
    b2: (1, 1)       float32
    """
    B, C, H, W = x.shape
    HW = H * W
    Ch = w1.shape[0]
    xr = x.reshape(B, C, HW)                 # channels-first: HW is lane-dense
    t_hw = _pick_hw_tile(HW, C)
    grid = (B, pl.cdiv(HW, t_hw))

    out = pl.pallas_call(
        _pa_kernel,
        grid=grid,
        in_specs=[
            pl.BlockSpec((1, C, t_hw), lambda b, i: (b, 0, i)),
            pl.BlockSpec((Ch, C), lambda b, i: (0, 0)),
            pl.BlockSpec((Ch, 1), lambda b, i: (0, 0)),
            pl.BlockSpec((Ch, 1), lambda b, i: (0, 0)),
            pl.BlockSpec((1, 1), lambda b, i: (0, 0)),
        ],
        out_specs=pl.BlockSpec((1, C, t_hw), lambda b, i: (b, 0, i)),
        out_shape=jax.ShapeDtypeStruct((B, C, HW), jnp.float32),
        compiler_params=pltpu.CompilerParams(
            dimension_semantics=("parallel", "parallel")),
    )(xr, w1, b1, w2, b2)
    return out.reshape(B, C, H, W)


# --------------------------------------------------------------------------
# Parameters (weight-norm wn() folds into the effective weight, so the
# effective weights are sampled directly) and a pure-JAX reference.
# --------------------------------------------------------------------------

def init_params(key, channel, reduction=16):
    ch = channel // reduction
    k1, k2, k3, k4 = jax.random.split(key, 4)
    w1 = (jax.random.normal(k1, (ch, channel), jnp.float32)
          / jnp.sqrt(channel)).astype(jnp.bfloat16)          # bf16 MXU operand
    b1 = jax.random.normal(k2, (ch, 1), jnp.float32) * 0.02
    w2 = jax.random.normal(k3, (ch, 1), jnp.float32) / jnp.sqrt(ch)
    b2 = jax.random.normal(k4, (1, 1), jnp.float32) * 0.02
    return w1, b1, w2, b2


def pa_layer_reference(x, w1, b1, w2, b2):
    B, C, H, W = x.shape
    xr = x.reshape(B, C, H * W)
    w1f = w1.astype(jnp.float32)
    h = jnp.maximum(
        jnp.einsum("oc,bct->bot", w1f, xr,
                   precision=jax.lax.Precision.HIGHEST) + b1[None], 0.0)
    logit = jnp.sum(h * w2[None], axis=1, keepdims=True) + b2[None]
    return (xr * jax.nn.sigmoid(logit)).reshape(B, C, H, W)


# --------------------------------------------------------------------------

if __name__ == "__main__":
    B, C, H, W = 2, 64, 16, 16          # channel must be >= reduction (16)
    key = jax.random.PRNGKey(0)
    kx, kp = jax.random.split(key)
    x = jax.random.normal(kx, (B, C, H, W), jnp.float32)
    w1, b1, w2, b2 = init_params(kp, C, reduction=16)

    fwd = jax.jit(pa_layer_forward)
    out = jax.block_until_ready(fwd(x, w1, b1, w2, b2))

    assert out.shape == (B, C, H, W), out.shape
    assert bool(jnp.all(jnp.isfinite(out)))
    ref = pa_layer_reference(x, w1, b1, w2, b2)
    err = float(jnp.max(jnp.abs(out - ref)))
    assert bool(jnp.allclose(out, ref, atol=2e-2, rtol=2e-2)), err
    print("KERNEL_OK")
</pallas_src>

<mosaic_0001>
module attributes {stable_mosaic.version = 11 : i64} {
  func.func @_pa_kernel(%arg0: i32, %arg1: i32, %arg2: memref<1x64x256xf32, #tpu.memory_space<vmem>>, %arg3: memref<4x64xbf16, #tpu.memory_space<vmem>>, %arg4: memref<4x1xf32, #tpu.memory_space<vmem>>, %arg5: memref<4x1xf32, #tpu.memory_space<vmem>>, %arg6: memref<1x1xf32, #tpu.memory_space<vmem>>, %arg7: memref<1x64x256xf32, #tpu.memory_space<vmem>>) attributes {dimension_semantics = [#tpu.dimension_semantics<parallel>, #tpu.dimension_semantics<parallel>], iteration_bounds = array<i64: 2, 1>, scalar_prefetch = 0 : i64, scratch_operands = 0 : i64, tpu.core_type = #tpu.core_type<tc>, window_params = [{transform_indices = @transform_0, window_bounds = array<i64: 1, 64, 256>}, {pipeline_mode = #tpu.pipeline_mode<synchronous>, transform_indices = @transform_1, window_bounds = array<i64: 4, 64>}, {pipeline_mode = #tpu.pipeline_mode<synchronous>, transform_indices = @transform_2, window_bounds = array<i64: 4, 1>}, {pipeline_mode = #tpu.pipeline_mode<synchronous>, transform_indices = @transform_3, window_bounds = array<i64: 4, 1>}, {pipeline_mode = #tpu.pipeline_mode<synchronous>, transform_indices = @transform_4, window_bounds = array<i64: 1, 1>}, {transform_indices = @transform_5, window_bounds = array<i64: 1, 64, 256>}]} {
    %c0 = arith.constant 0 : index
    %c0_0 = arith.constant 0 : index
    %c0_1 = arith.constant 0 : index
    %0 = vector.load %arg2[%c0, %c0_0, %c0_1] : memref<1x64x256xf32, #tpu.memory_space<vmem>>, vector<1x64x256xf32>
    %1 = vector.shape_cast %0 : vector<1x64x256xf32> to vector<64x256xf32>
    %c0_2 = arith.constant 0 : index
    %c0_3 = arith.constant 0 : index
    %2 = vector.load %arg3[%c0_2, %c0_3] : memref<4x64xbf16, #tpu.memory_space<vmem>>, vector<4x64xbf16>
    %3 = arith.truncf %1 : vector<64x256xf32> to vector<64x256xbf16>
    %cst = arith.constant dense<0.000000e+00> : vector<4x256xf32>
    %4 = tpu.matmul %2, %3, %cst {dimension_numbers = #tpu.dot_dimension_numbers<[1], [0], [0], [1], [0, 0, 1, 1], [], []>} : vector<4x64xbf16>, vector<64x256xbf16>, vector<4x256xf32> -> vector<4x256xf32>
    %c0_4 = arith.constant 0 : index
    %c0_5 = arith.constant 0 : index
    %5 = vector.load %arg4[%c0_4, %c0_5] : memref<4x1xf32, #tpu.memory_space<vmem>>, vector<4x1xf32>
    %6 = vector.broadcast %5 : vector<4x1xf32> to vector<4x256xf32>
    %7 = arith.addf %4, %6 : vector<4x256xf32>
    %cst_6 = arith.constant 0.000000e+00 : f32
    %8 = vector.broadcast %cst_6 : f32 to vector<4x256xf32>
    %9 = arith.maximumf %7, %8 : vector<4x256xf32>
    %c0_7 = arith.constant 0 : index
    %c0_8 = arith.constant 0 : index
    %10 = vector.load %arg5[%c0_7, %c0_8] : memref<4x1xf32, #tpu.memory_space<vmem>>, vector<4x1xf32>
    %11 = vector.broadcast %10 : vector<4x1xf32> to vector<4x256xf32>
    %12 = arith.mulf %9, %11 : vector<4x256xf32>
    %cst_9 = arith.constant dense<0.000000e+00> : vector<256xf32>
    %13 = vector.multi_reduction <add>, %12, %cst_9 [0] : vector<4x256xf32> to vector<256xf32>
    %14 = vector.shape_cast %13 : vector<256xf32> to vector<1x256xf32>
    %c0_10 = arith.constant 0 : index
    %c0_11 = arith.constant 0 : index
    %15 = vector.load %arg6[%c0_10, %c0_11] : memref<1x1xf32, #tpu.memory_space<vmem>>, vector<1x1xf32>
    %16 = vector.broadcast %15 : vector<1x1xf32> to vector<1x256xf32>
    %17 = arith.addf %14, %16 : vector<1x256xf32>
    %18 = arith.negf %17 : vector<1x256xf32>
    %19 = math.exp %18 : vector<1x256xf32>
    %cst_12 = arith.constant 1.000000e+00 : f32
    %20 = vector.broadcast %cst_12 : f32 to vector<1x256xf32>
    %21 = arith.addf %20, %19 : vector<1x256xf32>
    %22 = arith.divf %20, %21 : vector<1x256xf32>
    %23 = vector.broadcast %22 : vector<1x256xf32> to vector<64x256xf32>
    %24 = arith.mulf %1, %23 : vector<64x256xf32>
    %c0_13 = arith.constant 0 : index
    %c0_14 = arith.constant 0 : index
    %c0_15 = arith.constant 0 : index
    %25 = vector.load %arg7[%c0_13, %c0_14, %c0_15] : memref<1x64x256xf32, #tpu.memory_space<vmem>>, vector<1x64x256xf32>
    %26 = vector.shape_cast %25 : vector<1x64x256xf32> to vector<64x256xf32>
    %27 = vector.shape_cast %24 : vector<64x256xf32> to vector<1x64x256xf32>
    tpu.vector_store %arg7[%c0_13, %c0_14, %c0_15], %27 {strides = array<i32>} : memref<1x64x256xf32, #tpu.memory_space<vmem>>, vector<1x64x256xf32>,
    return
  }
  func.func @transform_0(%arg0: i32, %arg1: i32) -> (i32, i32, i32) {
    %c0_i32 = arith.constant 0 : i32
    %c0_i32_0 = arith.constant 0 : i32
    return %arg0, %c0_i32, %arg1 : i32, i32, i32
  }
  func.func @transform_1(%arg0: i32, %arg1: i32) -> (i32, i32) {
    %c0_i32 = arith.constant 0 : i32
    %c0_i32_0 = arith.constant 0 : i32
    %c0_i32_1 = arith.constant 0 : i32
    return %c0_i32, %c0_i32_0 : i32, i32
  }
  func.func @transform_2(%arg0: i32, %arg1: i32) -> (i32, i32) {
    %c0_i32 = arith.constant 0 : i32
    %c0_i32_0 = arith.constant 0 : i32
    %c0_i32_1 = arith.constant 0 : i32
    return %c0_i32, %c0_i32_0 : i32, i32
  }
  func.func @transform_3(%arg0: i32, %arg1: i32) -> (i32, i32) {
    %c0_i32 = arith.constant 0 : i32
    %c0_i32_0 = arith.constant 0 : i32
    %c0_i32_1 = arith.constant 0 : i32
    return %c0_i32, %c0_i32_0 : i32, i32
  }
  func.func @transform_4(%arg0: i32, %arg1: i32) -> (i32, i32) {
    %c0_i32 = arith.constant 0 : i32
    %c0_i32_0 = arith.constant 0 : i32
    %c0_i32_1 = arith.constant 0 : i32
    return %c0_i32, %c0_i32_0 : i32, i32
  }
  func.func @transform_5(%arg0: i32, %arg1: i32) -> (i32, i32, i32) {
    %c0_i32 = arith.constant 0 : i32
    %c0_i32_0 = arith.constant 0 : i32
    return %arg0, %c0_i32, %arg1 : i32, i32, i32
  }
}

</mosaic_0001>

<bundles_post_ra>
// kernel: pa_layer_forward.1
= control target key start
LH: loop header
LB: loop body
LE: loop exit
PB: predicated region body
PF: predicated region fallthrough
CT: control target
= control target key end

     0   :  { %s629_s20 = smov 0   ;;  %s631_s21 = smov 0   ;;  %s760_s0 = inlined_call_operand.vmem [shape: f32[2,64,256], index: 0, kind: input, shape index: {}]   ;;  %s761_s1 = inlined_call_operand.vmem [shape: bf16[4,64], index: 1, kind: input, shape index: {}]   ;;  %s762_s2 = inlined_call_operand.vmem [shape: f32[4,1], index: 2, kind: input, shape index: {}]   ;;  %s763_s3 = inlined_call_operand.vmem [shape: f32[4,1], index: 3, kind: input, shape index: {}]   ;;  %s764_s4 = inlined_call_operand.<no memory space> [shape: f32[1,1], index: 4, kind: input, shape index: {}]   ;;  %s765_s5 = inlined_call_operand.vmem [shape: f32[2,64,256], index: 5, kind: output, shape index: {}]  }
   0x1   :  { %v10_v0 = vstv %s764_s4  ;;  %s633_s22 = smov 0  }
   0x2   :  { %11 = vst [vmem:[#allocation2] sm:$0x1] %v10_v0 }
   0x3 LB: > { %s29_s4 = sadd.s32 1, %s589_s21  ;;  %p523_p0 = scmp.ge.s32.totalorder %s593_s22, 1  ;;  %s593_s22 = sphi %s633_s22, %s17_s22   ;;  %s589_s21 = sphi %s631_s21, %s767_s21   ;;  %s585_s20 = sphi %s629_s20, %s766_s20  }
   0x4   : > { %p31_p1 = scmp.ge.s32.totalorder %s29_s4, 2  ;;  %p210_p2 = scmp.lt.s32.totalorder %s593_s22, 3 }
   0x6   : > { %s769_s4 = smov (%p31_p1, %s29_s4), 0  ;;  %p211_p3 = pnand %p523_p0, %p210_p2 }
   0x7   : > { %p247_p4 = scmp.lt.s32.totalorder (!%p211_p3), %s585_s20, 1 }
   0x8   : > { %214 = sbr.rel (%p211_p3) target bundleno = 227 (0xe3), region = 40 }
   0xd   : > { %v292_v1 = vld [vmem:[%s762_s2] sm:$0xf]  ;;  %v595_v2 = vmov 0   ;;  %s771_s20 = smov (!%p247_p4, %s585_s20), 1  ;;  %vm298_vm0 = vcmask 523264   ;;  %vm338_vm1 = vcmask 1043456  }
   0xe   : > { %561 = vset.pattern.permute.xlu0 %v595_v2  ;;  %562 = vset.pattern.permute.xlu1 %v595_v2  ;;  %v353_v3 = vld [vmem:[#allocation2] sm:$0x1]  ;;  %s534_s25 = sshll.u32 %s771_s20, 7 }
   0xf   : > { %295 = vperm.xlu0 %561, %v292_v1   ;;  %356 = vperm.xlu1 %562, %v353_v3   ;;  %s254_s28 = scalar_lea.vmem %s760_s0, %s534_s25  ;;  %v330_v4 = vld [vmem:[%s763_s3] sm:$0xf]  ;;  %s717_s10 = scalar_lea.vmem %s765_s5, %s534_s25 }
  0x10   : > { %v661_v5 = vld [vmem:[%s254_s28 + $0x60] sm:$0xff]  ;;  %v663_v6 = vld [vmem:[%s254_s28 + $0x70] sm:$0xff]  ;;  %v665_v7 = vld [vmem:[%s254_s28 + $0x68] sm:$0xff] }
  0x11   : > { %v290_v8 = vpack.c.bf16 %v663_v6, %v661_v5  ;;  %v669_v9 = vld [vmem:[%s254_s28 + $0x78] sm:$0xff]  ;;  %v671_v10 = vld [vmem:[%s254_s28 + $0x40] sm:$0xff]  ;;  %v673_v11 = vld [vmem:[%s254_s28 + $0x50] sm:$0xff] }
  0x12   : > { %v291_v12 = vpack.c.bf16 %v669_v9, %v665_v7  ;;  %v677_v13 = vld [vmem:[%s254_s28 + $0x48] sm:$0xff]  ;;  %v679_v14 = vld [vmem:[%s254_s28 + $0x58] sm:$0xff]  ;;  %v288_v15 = vpack.c.bf16 %v673_v11, %v671_v10  ;;  %v685_v17 = vld [vmem:[%s254_s28 + $0x20] sm:$0xff] }
  0x13   : > { %306 = vmatpush.bf16.msra.mxu0 %v290_v8  ;;  %v289_v16 = vpack.c.bf16 %v679_v14, %v677_v13  ;;  %v687_v18 = vld [vmem:[%s254_s28 + $0x30] sm:$0xff]  ;;  %v689_v19 = vld [vmem:[%s254_s28 + $0x28] sm:$0xff]  ;;  %v691_v20 = vld [vmem:[%s254_s28 + $0x38] sm:$0xff] }
  0x14   : > { %319 = vmatpush.bf16.msra.mxu1 %v291_v12  ;;  %v286_v21 = vpack.c.bf16 %v687_v18, %v685_v17  ;;  %v287_v22 = vpack.c.bf16 %v691_v20, %v689_v19  ;;  %v697_v23 = vld [vmem:[%s254_s28] sm:$0xff]  ;;  %v699_v24 = vld [vmem:[%s254_s28 + $0x10] sm:$0xff]  ;;  %v701_v25 = vld [vmem:[%s254_s28 + $0x8] sm:$0xff] }
  0x15   : > { %v703_v26 = vld [vmem:[%s254_s28 + $0x18] sm:$0xff]  ;;  %v284_v27 = vpack.c.bf16 %v699_v24, %v697_v23  ;;  %v283_v29 = vld [vmem:[%s761_s1] sm:$0x3] }
  0x16   : > { %v285_v28 = vpack.c.bf16 %v703_v26, %v701_v25 }
  0x17   : > { %333 = vperm.xlu0 %561, %v330_v4   ;;  %307 = vmatpush.bf16.msra.mxu0 %v288_v15 }
  0x18   : > { %320 = vmatpush.bf16.msra.mxu1 %v289_v16 }
  0x1b   : > { %308 = vmatpush.bf16.msra.mxu0 %v286_v21 }
  0x1c   : > { %321 = vmatpush.bf16.msra.mxu1 %v287_v22 }
  0x1f   : > { %309 = vmatpush.bf16.msra.mxu0 %v284_v27 }
  0x20   : > { %322 = vmatpush.bf16.msra.mxu1 %v285_v28 }
  0x22   : > { %528 = vmatmul.msk.bf16.vlgmr.msra.gmra.mxu0 %vm298_vm0, %v283_v29 }
  0x23   : > { %529 = vmatmul.msk.bf16.vlgmr.msra.gmra.mxu1 %vm298_vm0, %v283_v29 }
  0x81   : > { %v296_v30 = vpop.permute.xlu0 %295  ;;  %v357_v49 = vpop.permute.xlu1 %356 }
  0x82   : > { %v359_v54 = vperm.slane %v357_v49, 0 }
  0x89   : > { %v334_v36 = vpop.permute.xlu0 %333 }
  0x9f   : > { %v311_v31 = vpop.f32.mrf.mxu0 }
  0xa0   : > { %v312_v32 = vadd.f32 %v311_v31, %v296_v30  ;;  %v324_v33 = vpop.f32.mrf.mxu1 }
  0xa1   : > { %v325_v34 = vadd.f32 %v324_v33, %v296_v30 }
  0xa2   : > { %v328_v35 = vmax.f32 %v312_v32, 0.0 }
  0xa3   : > { %v329_v37 = vmax.f32 %v325_v34, 0.0 }
  0xa4   : > { %v336_v38 = vmul.f32 %v334_v36, %v328_v35 }
  0xa5   : > { %v337_v39 = vmul.f32 %v334_v36, %v329_v37 }
  0xa6   : > { %v339_v40 = vsel %vm338_vm1, %v336_v38, 0.0 }
  0xa7   : > { %v340_v41 = vrot.slane %v339_v40, 4  ;;  %v346_v42 = vsel %vm338_vm1, %v337_v39, 0.0  ;;  %v313_v43 = vpop.f32.mrf.mxu0 }
  0xa8   : > { %v347_v44 = vrot.slane %v346_v42, 4  ;;  %v326_v45 = vpop.f32.mrf.mxu1 }
  0xa9   : > { %v341_v46 = vadd.f32 %v340_v41, %v339_v40 }
  0xaa   : > { %v348_v47 = vadd.f32 %v347_v44, %v346_v42 }
  0xab   : > { %v342_v48 = vrot.slane %v341_v46, 2 }
  0xac   : > { %v349_v50 = vrot.slane %v348_v47, 2 }
  0xad   : > { %v343_v51 = vadd.f32 %v342_v48, %v341_v46 }
  0xae   : > { %v350_v52 = vadd.f32 %v349_v50, %v348_v47 }
  0xaf   : > { %v344_v53 = vrot.slane %v343_v51, 1 }
  0xb0   : > { %v351_v55 = vrot.slane %v350_v52, 1 }
  0xb1   : > { %v345_v56 = vadd.f32 %v344_v53, %v343_v51 }
  0xb2   : > { %v352_v57 = vadd.f32 %v351_v55, %v350_v52 }
  0xb3   : > { %v360_v58 = vadd.f32 %v359_v54, %v345_v56 }
  0xb4   : > { %v361_v59 = vadd.f32 %v359_v54, %v352_v57 }
  0xb5   : > { %v530_v60 = vmul.f32 -1.442695, %v360_v58 }
  0xb6   : > { %v531_v61 = vmul.f32 -1.442695, %v361_v59 }
  0xb7   : > { %563 = vpow2.f32 %v530_v60 }
  0xb8   : > { %565 = vpow2.f32 %v531_v61 }
  0xbd   : > { %v564_v62 = vpop.eup %563 }
  0xbe   : > { %v566_v63 = vpop.eup %565  ;;  %v368_v0 = vadd.f32 1.0, %v564_v62 }
  0xbf   : > { %v369_v1 = vadd.f32 1.0, %v566_v63 }
  0xc0   : > { %567 = vrcp.f32 %v368_v0  ;;  %v381_v15 = vand.u32 2147483648, %v368_v0  ;;  %v379_v22 = vand.u32 2147483647, %v368_v0  ;;  %vm375_vm4 = vweird.f32 %v368_v0 }
  0xc1   : > { %569 = vrcp.f32 %v369_v1  ;;  %v396_v27 = vand.u32 2147483648, %v369_v1  ;;  %v394_v29 = vand.u32 2147483647, %v369_v1  ;;  %vm390_vm6 = vweird.f32 %v369_v1 }
  0xc2   : > { %v382_v31 = vor.u32 1.1754944e-38, %v381_v15  ;;  %vm380_vm7 = vcmp.eq.f32.partialorder %v379_v22, 8.507059e+37 }
  0xc3   : > { %v397_v34 = vor.u32 1.1754944e-38, %v396_v27  ;;  %vm395_vm9 = vcmp.eq.f32.partialorder %v394_v29, 8.507059e+37 }
  0xc6   : > { %v568_v2 = vpop.eup %567 }
  0xc7   : > { %v570_v3 = vpop.eup %569  ;;  %v371_v4 = vmul.f32 %v568_v2, %v368_v0  ;;  %vm376_vm2 = vweird.f32 %v568_v2 }
  0xc8   : > { %v386_v8 = vmul.f32 %v570_v3, %v369_v1  ;;  %vm391_vm3 = vweird.f32 %v570_v3  ;;  %vm377_vm5 = vmor %vm375_vm4, %vm376_vm2 }
  0xc9   : > { %v372_v12 = vsub.f32 1.0, %v371_v4  ;;  %vm392_vm8 = vmor %vm390_vm6, %vm391_vm3 }
  0xca   : > { %v387_v16 = vsub.f32 1.0, %v386_v8 }
  0xcb   : > { %v373_v21 = vmul.f32 %v568_v2, %v372_v12 }
  0xcc   : > { %v388_v28 = vmul.f32 %v570_v3, %v387_v16 }
  0xcd   : > { %v374_v30 = vadd.f32 %v568_v2, %v373_v21 }
  0xce   : > { %v389_v32 = vadd.f32 %v570_v3, %v388_v28 }
  0xcf   : > { %v378_v33 = vsel %vm377_vm5, %v568_v2, %v374_v30 }
  0xd0   : > { %v383_v35 = vsel %vm380_vm7, %v382_v31, %v378_v33  ;;  %v393_v36 = vsel %vm392_vm8, %v570_v3, %v389_v32 }
  0xd1   : > { %v398_v37 = vsel %vm395_vm9, %v397_v34, %v393_v36  ;;  %v400_v38 = vmul.f32 %v383_v35, %v697_v23  ;;  %v402_v39 = vmul.f32 %v383_v35, %v699_v24  ;;  %v404_v42 = vmul.f32 %v383_v35, %v685_v17 }
  0xd2   : > { %v401_v40 = vmul.f32 %v398_v37, %v701_v25  ;;  %v403_v41 = vmul.f32 %v398_v37, %v703_v26  ;;  %v405_v43 = vmul.f32 %v398_v37, %v689_v19  ;;  %v406_v44 = vmul.f32 %v383_v35, %v687_v18 }
  0xd3   : > { %416 = vst [vmem:[%s717_s10] sm:$0xff] %v400_v38  ;;  %v407_v23 = vmul.f32 %v398_v37, %v691_v20  ;;  %v408_v24 = vmul.f32 %v383_v35, %v671_v10  ;;  %v409_v17 = vmul.f32 %v398_v37, %v677_v13  ;;  %v410_v19 = vmul.f32 %v383_v35, %v673_v11 }
  0xd4   : > { %417 = vst [vmem:[%s717_s10 + $0x8] sm:$0xff] %v401_v40  ;;  %v411_v18 = vmul.f32 %v398_v37, %v679_v14  ;;  %v412_v20 = vmul.f32 %v383_v35, %v661_v5  ;;  %v413_v25 = vmul.f32 %v398_v37, %v665_v7  ;;  %v414_v10 = vmul.f32 %v383_v35, %v663_v6 }
  0xd5   : > { %418 = vst [vmem:[%s717_s10 + $0x10] sm:$0xff] %v402_v39  ;;  %v415_v13 = vmul.f32 %v398_v37, %v669_v9 }
  0xd6   : > { %419 = vst [vmem:[%s717_s10 + $0x18] sm:$0xff] %v403_v41 }
  0xd7   : > { %420 = vst [vmem:[%s717_s10 + $0x20] sm:$0xff] %v404_v42 }
  0xd8   : > { %421 = vst [vmem:[%s717_s10 + $0x28] sm:$0xff] %v405_v43 }
  0xd9   : > { %422 = vst [vmem:[%s717_s10 + $0x30] sm:$0xff] %v406_v44 }
  0xda   : > { %423 = vst [vmem:[%s717_s10 + $0x38] sm:$0xff] %v407_v23 }
  0xdb   : > { %424 = vst [vmem:[%s717_s10 + $0x40] sm:$0xff] %v408_v24 }
  0xdc   : > { %425 = vst [vmem:[%s717_s10 + $0x48] sm:$0xff] %v409_v17 }
  0xdd   : > { %426 = vst [vmem:[%s717_s10 + $0x50] sm:$0xff] %v410_v19 }
  0xde   : > { %427 = vst [vmem:[%s717_s10 + $0x58] sm:$0xff] %v411_v18 }
  0xdf   : > { %428 = vst [vmem:[%s717_s10 + $0x60] sm:$0xff] %v412_v20 }
  0xe0   : > { %429 = vst [vmem:[%s717_s10 + $0x68] sm:$0xff] %v413_v25 }
  0xe1   : > { %430 = vst [vmem:[%s717_s10 + $0x70] sm:$0xff] %v414_v10 }
  0xe2   : > { %431 = vst [vmem:[%s717_s10 + $0x78] sm:$0xff] %v415_v13 }
  0xe3 PF: > { %s17_s22 = sadd.s32 1, %s593_s22   ;;  %s766_s20 = smov %s589_s21 }
  0xe4   : > { %p14_p5 = scmp.ge.s32.totalorder %s17_s22, 4   ;;  %s767_s21 = smov %s769_s4 }
  0xe6   :  { %16 = sbr.rel (!%p14_p5) target bundleno = 3 (0x3), region = 70 }

</bundles_post_ra>
